<compile_context>
chip_gen: v7x
topology: tpu7x:2x2x1
jax: 0.10.0
libtpu: 0.0.40
codegen_flags: <defaults>
</compile_context>

<pallas_src>
import functools

import jax
import jax.numpy as jnp
from jax import lax
from jax.experimental import pallas as pl
from jax.experimental.pallas import tpu as pltpu  # noqa: F401  (kept for TPU-specific params if scaled up)


def _attn_general_kernel(hidden_ref, enc_ref, w_ref, out_ref, *, seq_len):
    """hidden_ref: [B, D], enc_ref: [B, S_pad, E], w_ref: [D, E] (PyTorch layout),
       out_ref: [B, 1, S_pad] (softmax over the padded seq axis)."""
    # Fold the Linear onto the decoder-hidden side:
    #   score[b,s] = sum_d h[b,d] * (enc[b,s,:] @ W^T + bias)[d]
    #              = sum_e enc[b,s,e] * (h @ W)[b,e]  +  h[b,:]·bias
    # The bias term is constant over s and cancels under softmax, so it is dropped.
    u = jnp.dot(hidden_ref[...], w_ref[...],
                preferred_element_type=jnp.float32)              # [B, E]   (MXU)

    # Batched MXU contraction; the padded seq axis (multiple of 128) lands on the
    # lane dimension so the softmax math and the output store are lane-dense.
    scores = jnp.einsum("bqe,bse->bqs", u[:, None, :], enc_ref[...],
                        preferred_element_type=jnp.float32)      # [B, 1, S_pad]

    if seq_len < scores.shape[-1]:
        col = lax.broadcasted_iota(jnp.int32, scores.shape, 2)
        scores = jnp.where(col < seq_len, scores, jnp.finfo(jnp.float32).min)

    # Max-stabilized softmax over the seq axis.
    m = jnp.max(scores, axis=-1, keepdims=True)
    e = jnp.exp(scores - m)
    denom = jnp.sum(e, axis=-1, keepdims=True)
    # pl.reciprocal(approx=True) would route the divide to the EUP vrcp (free slot)
    # but carries ~2^-12 relative error; keep the exact reciprocal to hold the
    # 1e-5 self-check — the cost is negligible at this size.
    out_ref[...] = (e * pl.reciprocal(denom, approx=False)).astype(out_ref.dtype)


def attn_general(hidden, encoder_hiddens, weight, bias=None):
    """hidden: [B, D] f32, encoder_hiddens: [B, S, E] f32,
       weight: [D, E] f32 (PyTorch nn.Linear weight, used as-is — no transpose),
       bias:  accepted for API parity but unused (cancels under the softmax)."""
    del bias  # hidden·bias is constant over the seq axis -> softmax-invariant.
    B, D = hidden.shape
    _, S, E = encoder_hiddens.shape

    # Lane-dense output: pad the seq axis up to a multiple of 128 (min 128) in the
    # wrapper, mask inside the kernel, and slice back afterwards.
    S_pad = max(128, ((S + 127) // 128) * 128)
    if S_pad != S:
        encoder_hiddens = jnp.pad(encoder_hiddens,
                                  ((0, 0), (0, S_pad - S), (0, 0)))

    # Everything fits trivially in VMEM, so run a single grid-less invocation:
    # all operands are full-array VMEM blocks (no per-step pipeline bookkeeping,
    # no double-buffered "shared" weight spec).
    # At realistic sizes (large S, E=D>=1024) one would instead tile S as a
    # "parallel" grid axis, cast enc/W to bf16 at the MXU inputs (f32 accumulate),
    # and size the enc tiles against v7x's 64 MiB VMEM.
    out = pl.pallas_call(
        functools.partial(_attn_general_kernel, seq_len=S),
        out_shape=jax.ShapeDtypeStruct((B, 1, S_pad), jnp.float32),
    )(hidden, encoder_hiddens, weight)
    return out[:, 0, :S]


def attn_general_ref(hidden, encoder_hiddens, weight, bias):
    """Pure-JAX reference matching the PyTorch module exactly (bias included)."""
    energy = jnp.einsum("bse,de->bsd", encoder_hiddens, weight) + bias  # [B,S,D]
    scores = jnp.einsum("bd,bsd->bs", hidden, energy)                   # [B,S]
    return jax.nn.softmax(scores, axis=-1)


if __name__ == "__main__":
    # Module config: method='general', en_hidden=32, de_hidden=32,
    # n_en_layers=1, n_de_layers=1, bidirectional=False
    #   -> en_hidden_size = 32 (E), de_hidden_size = 32 (D)
    B, S, E, D = 2, 8, 32, 32

    key = jax.random.PRNGKey(0)
    k_h, k_enc, k_w, k_b = jax.random.split(key, 4)

    hidden = jax.random.normal(k_h, (B, D), dtype=jnp.float32)
    encoder_hiddens = jax.random.normal(k_enc, (B, S, E), dtype=jnp.float32)

    # Deterministic nn.Linear(E, D) params in PyTorch layout: weight [D, E], bias [D].
    bound = 1.0 / (E ** 0.5)
    weight = jax.random.uniform(k_w, (D, E), minval=-bound, maxval=bound,
                                dtype=jnp.float32)
    bias = jax.random.uniform(k_b, (D,), minval=-bound, maxval=bound,
                              dtype=jnp.float32)

    out = attn_general(hidden, encoder_hiddens, weight, bias)
    out = jax.block_until_ready(out)

    ref = attn_general_ref(hidden, encoder_hiddens, weight, bias)
    assert out.shape == (B, S)
    assert jnp.allclose(out, ref, atol=1e-5, rtol=1e-5), "mismatch vs reference"
    assert jnp.allclose(jnp.sum(out, axis=-1), 1.0, atol=1e-5)

    print("KERNEL_OK")
</pallas_src>

<mosaic_0001>
module attributes {stable_mosaic.version = 11 : i64} {
  func.func @_attn_general_kernel(%arg0: memref<2x32xf32, #tpu.memory_space<vmem>>, %arg1: memref<2x128x32xf32, #tpu.memory_space<vmem>>, %arg2: memref<32x32xf32, #tpu.memory_space<vmem>>, %arg3: memref<2x1x128xf32, #tpu.memory_space<vmem>>) attributes {dimension_semantics = [], scalar_prefetch = 0 : i64, scratch_operands = 0 : i64, tpu.core_type = #tpu.core_type<tc>} {
    %c0 = arith.constant 0 : index
    %c0_0 = arith.constant 0 : index
    %0 = vector.load %arg0[%c0, %c0_0] : memref<2x32xf32, #tpu.memory_space<vmem>>, vector<2x32xf32>
    %c0_1 = arith.constant 0 : index
    %c0_2 = arith.constant 0 : index
    %1 = vector.load %arg2[%c0_1, %c0_2] : memref<32x32xf32, #tpu.memory_space<vmem>>, vector<32x32xf32>
    %cst = arith.constant dense<0.000000e+00> : vector<2x32xf32>
    %2 = tpu.matmul %0, %1, %cst {dimension_numbers = #tpu.dot_dimension_numbers<[1], [0], [0], [1], [0, 0, 1, 1], [], []>} : vector<2x32xf32>, vector<32x32xf32>, vector<2x32xf32> -> vector<2x32xf32>
    %3 = vector.shape_cast %2 : vector<2x32xf32> to vector<2x1x32xf32>
    %c0_3 = arith.constant 0 : index
    %c0_4 = arith.constant 0 : index
    %c0_5 = arith.constant 0 : index
    %4 = vector.load %arg1[%c0_3, %c0_4, %c0_5] : memref<2x128x32xf32, #tpu.memory_space<vmem>>, vector<2x128x32xf32>
    "tpu.trace_start"() <{level = 10 : i32, message = "bqe,bse->bqs"}> : () -> ()
    %cst_6 = arith.constant dense<0.000000e+00> : vector<2x1x128xf32>
    %5 = tpu.matmul %3, %4, %cst_6 {dimension_numbers = #tpu.dot_dimension_numbers<[2], [2], [1], [1], [0, 0, 0, 1, 1, 1], [0], [0]>} : vector<2x1x32xf32>, vector<2x128x32xf32>, vector<2x1x128xf32> -> vector<2x1x128xf32>
    "tpu.trace_stop"() : () -> ()
    %6 = tpu.iota {dimensions = array<i32: 2>} : vector<2x1x128xi32>
    %c8_i32 = arith.constant 8 : i32
    %7 = vector.broadcast %c8_i32 : i32 to vector<2x1x128xi32>
    %8 = arith.cmpi slt, %6, %7 : vector<2x1x128xi32>
    %cst_7 = arith.constant -3.40282347E+38 : f32
    %9 = vector.broadcast %cst_7 : f32 to vector<2x1x128xf32>
    %10 = arith.select %8, %5, %9 : vector<2x1x128xi1>, vector<2x1x128xf32>
    %cst_8 = arith.constant dense<0xFF800000> : vector<2x1xf32>
    %11 = vector.multi_reduction <maximumf>, %10, %cst_8 [2] : vector<2x1x128xf32> to vector<2x1xf32>
    %12 = vector.shape_cast %11 : vector<2x1xf32> to vector<2x1x1xf32>
    %13 = vector.broadcast %12 : vector<2x1x1xf32> to vector<2x1x128xf32>
    %14 = arith.subf %10, %13 : vector<2x1x128xf32>
    %15 = math.exp %14 : vector<2x1x128xf32>
    %cst_9 = arith.constant dense<0.000000e+00> : vector<2x1xf32>
    %16 = vector.multi_reduction <add>, %15, %cst_9 [2] : vector<2x1x128xf32> to vector<2x1xf32>
    %17 = vector.shape_cast %16 : vector<2x1xf32> to vector<2x1x1xf32>
    %18 = tpu.reciprocal %17 : vector<2x1x1xf32> -> vector<2x1x1xf32>
    %19 = vector.broadcast %18 : vector<2x1x1xf32> to vector<2x1x128xf32>
    %20 = arith.mulf %15, %19 : vector<2x1x128xf32>
    %c0_10 = arith.constant 0 : index
    %c0_11 = arith.constant 0 : index
    %c0_12 = arith.constant 0 : index
    %21 = vector.load %arg3[%c0_10, %c0_11, %c0_12] : memref<2x1x128xf32, #tpu.memory_space<vmem>>, vector<2x1x128xf32>
    tpu.vector_store %arg3[%c0_10, %c0_11, %c0_12], %20 {strides = array<i32>} : memref<2x1x128xf32, #tpu.memory_space<vmem>>, vector<2x1x128xf32>,
    return
  }
}

</mosaic_0001>

<bundles_post_ra>
// kernel: tpu_custom_call.1
= control target key start
LH: loop header
LB: loop body
LE: loop exit
PB: predicated region body
PF: predicated region fallthrough
CT: control target
= control target key end

     0   :  { %v699_v3 = vmov 0.0|0.0   ;;  %vm700_vm0 = vmmov 0   ;;  %v701_v6 = vmov 0.0   ;;  %vm20_vm1 = vcmask 261120   ;;  %s915_s0 = inlined_call_operand.vmem [shape: f32[2,32], index: 0, kind: input, shape index: {}]   ;;  %s916_s1 = inlined_call_operand.vmem [shape: f32[2,128,32], index: 1, kind: input, shape index: {}]   ;;  %s917_s2 = inlined_call_operand.vmem [shape: f32[32,32], index: 2, kind: input, shape index: {}]   ;;  %s918_s3 = inlined_call_operand.hbm [shape: f32[2,1,128], index: 3, kind: output, shape index: {}]  }
   0x1   :  { %v16_v0 = vld [vmem:[%s917_s2] sm:$0xff]  ;;  %v17_v1 = vld [vmem:[%s917_s2 + $0x8] sm:$0xff]  ;;  %v18_v2 = vld [vmem:[%s917_s2 + $0x10] sm:$0xff]  ;;  %590 = vmatprep.subr.bf16.mxu0 %v699_v3  ;;  %517 = vmatprep.mubr.msk.f32.mxu0 %vm700_vm0, %v701_v6 }
   0x2   :  { %v591_v4 = vpack.c.bf16 %v17_v1, %v16_v0  ;;  %v19_v5 = vld [vmem:[%s917_s2 + $0x18] sm:$0xff]  ;;  %v117_v7 = vld [vmem:[%s916_s1] sm:$0xff]  ;;  %vm745_vm2 = vmpackc.low %vm20_vm1, %vm20_vm1  ;;  %596 = vmatprep.subr.bf16.mxu1 %v699_v3  ;;  %552 = vmatprep.mubr.msk.f32.mxu1 %vm700_vm0, %v701_v6 }
   0x3   :  { %v118_v9 = vld [vmem:[%s916_s1 + $0x8] sm:$0xff]  ;;  %v594_v10 = vpack.c.bf16 %v19_v5, %v18_v2  ;;  %v119_v12 = vld [vmem:[%s916_s1 + $0x10] sm:$0xff]  ;;  %v120_v13 = vld [vmem:[%s916_s1 + $0x18] sm:$0xff] }
   0x4   :  { %592 = vmatpush3.bf16.msra.mxu0 %v591_v4  ;;  %v597_v11 = vpack.c.bf16 %v118_v9, %v117_v7  ;;  %v15_v14 = vld [vmem:[%s915_s0] sm:$0x3]  ;;  %v134_v16 = vld [vmem:[%s916_s1 + $0x88] sm:$0xff]  ;;  %v601_v17 = vpack.c.bf16 %v120_v13, %v119_v12 }
   0x5   :  { %593 = vmatprep.subr.bf16.mxu0 %v699_v3  ;;  %v133_v15 = vld [vmem:[%s916_s1 + $0x80] sm:$0xff] }
   0x6   :  { %599 = vmatpush3.bf16.xpose.msk.msra.mxu1 %vm745_vm2, %v597_v11  ;;  %v629_v18 = vpack.c.bf16 %v134_v16, %v133_v15 }
   0x7   :  { %600 = vmatprep.subr.bf16.mxu1 %v699_v3 }
   0x8   :  { %595 = vmatpush3.bf16.msra.mxu0 %v594_v10 }
   0x9   :  { %628 = vmatprep.subr.bf16.mxu0 %v699_v3 }
   0xb   :  { %518 = vmatmul.mubr.msk.f32.vlgmr.msra.gmra.mrb[0].mxu0 %vm20_vm1, %v15_v14 }
   0xc   :  { %587 = vmatprep.mubr.msk.f32.mxu0 %vm700_vm0, %v701_v6 }
   0xd   :  { %8 = vsyncpa [#allocation3], 0  ;;  %v121_v19 = vld [vmem:[%s916_s1 + $0x20] sm:$0xff]  ;;  %v122_v20 = vld [vmem:[%s916_s1 + $0x28] sm:$0xff]  ;;  %v702_v58 = vmov 1966171168   ;;  %v98_v60 = vlaneseq }
   0xe   :  { %603 = vmatpush3.bf16.xpose.msk.msra.mxu1 %vm745_vm2, %v601_v17  ;;  %v135_v21 = vld [vmem:[%s916_s1 + $0x90] sm:$0xff]  ;;  %v136_v22 = vld [vmem:[%s916_s1 + $0x98] sm:$0xff]  ;;  %v605_v23 = vpack.c.bf16 %v122_v20, %v121_v19  ;;  %v137_v27 = vld [vmem:[%s916_s1 + $0xa0] sm:$0xff]  ;;  %v96_v59 = vunpack.c.l.s4 %v702_v58  ;;  %vm394_vm4 = vcmask 1040384  }
   0xf   :  { %604 = vmatprep.subr.bf16.mxu1 %v699_v3  ;;  %v633_v24 = vpack.c.bf16 %v136_v22, %v135_v21  ;;  %v123_v25 = vld [vmem:[%s916_s1 + $0x30] sm:$0xff]  ;;  %v124_v26 = vld [vmem:[%s916_s1 + $0x38] sm:$0xff]  ;;  %v138_v28 = vld [vmem:[%s916_s1 + $0xa8] sm:$0xff]  ;;  %v99_v62 = vshrl.u32 %v98_v60, 7  ;;  %v390_v6 = vand.u32 127, %v98_v60 }
  0x10   :  { %v609_v29 = vpack.c.bf16 %v124_v26, %v123_v25  ;;  %v637_v30 = vpack.c.bf16 %v138_v28, %v137_v27  ;;  %v125_v31 = vld [vmem:[%s916_s1 + $0x40] sm:$0xff]  ;;  %v126_v32 = vld [vmem:[%s916_s1 + $0x48] sm:$0xff]  ;;  %v139_v33 = vld [vmem:[%s916_s1 + $0xb0] sm:$0xff]  ;;  %v97_v61 = vunpack.c.0.s8 %v96_v59 }
  0x11   :  { %631 = vmatpush3.bf16.xpose.msk.msra.mxu0 %vm745_vm2, %v629_v18  ;;  %v140_v34 = vld [vmem:[%s916_s1 + $0xb8] sm:$0xff]  ;;  %v613_v35 = vpack.c.bf16 %v126_v32, %v125_v31  ;;  %v127_v37 = vld [vmem:[%s916_s1 + $0x50] sm:$0xff]  ;;  %v141_v39 = vld [vmem:[%s916_s1 + $0xc0] sm:$0xff]  ;;  %vm391_vm3 = vcmp.lt.s32.totalorder %v390_v6, 8 }
  0x12   :  { %632 = vmatprep.subr.bf16.mxu0 %v699_v3  ;;  %v641_v36 = vpack.c.bf16 %v140_v34, %v139_v33  ;;  %v128_v38 = vld [vmem:[%s916_s1 + $0x58] sm:$0xff]  ;;  %v142_v40 = vld [vmem:[%s916_s1 + $0xc8] sm:$0xff]  ;;  %v129_v43 = vld [vmem:[%s916_s1 + $0x60] sm:$0xff]  ;;  %v100_v63 = vsub.s32 %v97_v61, %v99_v62 }
  0x13   :  { %v617_v41 = vpack.c.bf16 %v128_v38, %v127_v37  ;;  %v645_v42 = vpack.c.bf16 %v142_v40, %v141_v39  ;;  %v130_v44 = vld [vmem:[%s916_s1 + $0x68] sm:$0xff]  ;;  %v143_v45 = vld [vmem:[%s916_s1 + $0xd0] sm:$0xff]  ;;  %v144_v46 = vld [vmem:[%s916_s1 + $0xd8] sm:$0xff] }
  0x14   :  { %v621_v47 = vpack.c.bf16 %v130_v44, %v129_v43  ;;  %v649_v48 = vpack.c.bf16 %v144_v46, %v143_v45  ;;  %v131_v49 = vld [vmem:[%s916_s1 + $0x70] sm:$0xff]  ;;  %v132_v50 = vld [vmem:[%s916_s1 + $0x78] sm:$0xff]  ;;  %v145_v51 = vld [vmem:[%s916_s1 + $0xe0] sm:$0xff] }
  0x15   :  { %v146_v52 = vld [vmem:[%s916_s1 + $0xe8] sm:$0xff]  ;;  %v625_v53 = vpack.c.bf16 %v132_v50, %v131_v49  ;;  %v147_v55 = vld [vmem:[%s916_s1 + $0xf0] sm:$0xff]  ;;  %v148_v56 = vld [vmem:[%s916_s1 + $0xf8] sm:$0xff]  ;;  %s703_s1 = smov [#allocation2]  }
  0x16   :  { %607 = vmatpush3.bf16.xpose.msk.msra.mxu1 %vm745_vm2, %v605_v23  ;;  %v653_v54 = vpack.c.bf16 %v146_v52, %v145_v51  ;;  %v657_v57 = vpack.c.bf16 %v148_v56, %v147_v55  ;;  %s424_s27 = sshll.u32 %s703_s1, 4  ;;  %s425_s27 = int_to_ptr.vmem [resolvable:$true] %s424_s27 }
  0x17   :  { %608 = vmatprep.subr.bf16.mxu1 %v699_v3  ;;  %s675_s28 = scalar_lea.vmem %s425_s27, 32  ;;  %p680_p1 = scmp.lt.s32.totalorder %s425_s27, %s425_s27 }
  0x18   :  { %p676_p0 = scmp.ne.s32.totalorder %s425_s27, %s675_s28  ;;  %p681_p2 = scmp.lt.s32.totalorder %s675_s28, %s675_s28 }
  0x19   :  { %635 = vmatpush3.bf16.xpose.msk.msra.mxu0 %vm745_vm2, %v633_v24 }
  0x1a   :  { %636 = vmatprep.subr.bf16.mxu0 %v699_v3  ;;  %p682_p3 = por %p681_p2, %p680_p1 }
  0x1c   :  { %p683_p4 = pnand %p682_p3, %p676_p0 }
  0x1e   :  { %611 = vmatpush3.bf16.xpose.msk.msra.mxu1 %vm745_vm2, %v609_v29 }
  0x1f   :  { %612 = vmatprep.subr.bf16.mxu1 %v699_v3 }
  0x21   :  { %639 = vmatpush3.bf16.xpose.msk.msra.mxu0 %vm745_vm2, %v637_v30 }
  0x22   :  { %640 = vmatprep.subr.bf16.mxu0 %v699_v3 }
  0x26   :  { %615 = vmatpush3.bf16.xpose.msk.msra.mxu1 %vm745_vm2, %v613_v35 }
  0x27   :  { %616 = vmatprep.subr.bf16.mxu1 %v699_v3 }
  0x29   :  { %643 = vmatpush3.bf16.xpose.msk.msra.mxu0 %vm745_vm2, %v641_v36 }
  0x2a   :  { %644 = vmatprep.subr.bf16.mxu0 %v699_v3 }
  0x2e   :  { %619 = vmatpush3.bf16.xpose.msk.msra.mxu1 %vm745_vm2, %v617_v41 }
  0x2f   :  { %620 = vmatprep.subr.bf16.mxu1 %v699_v3 }
  0x31   :  { %647 = vmatpush3.bf16.xpose.msk.msra.mxu0 %vm745_vm2, %v645_v42 }
  0x32   :  { %648 = vmatprep.subr.bf16.mxu0 %v699_v3 }
  0x36   :  { %623 = vmatpush3.bf16.xpose.msk.msra.mxu1 %vm745_vm2, %v621_v47 }
  0x37   :  { %624 = vmatprep.subr.bf16.mxu1 %v699_v3 }
  0x39   :  { %651 = vmatpush3.bf16.xpose.msk.msra.mxu0 %vm745_vm2, %v649_v48 }
  0x3a   :  { %652 = vmatprep.subr.bf16.mxu0 %v699_v3 }
  0x3e   :  { %627 = vmatpush3.bf16.xpose.msk.msra.mxu1 %vm745_vm2, %v625_v53 }
  0x41   :  { %655 = vmatpush3.bf16.xpose.msk.msra.mxu0 %vm745_vm2, %v653_v54 }
  0x42   :  { %656 = vmatprep.subr.bf16.mxu0 %v699_v3 }
  0x49   :  { %659 = vmatpush3.bf16.xpose.msk.msra.mxu0 %vm745_vm2, %v657_v57 }
  0xde   :  { %v90_v0 = vpop.f32.mrb[0].mxu0 }
  0xdf   :  { %v101_v1 = vrot.slane %v90_v0, %v100_v63  ;;  %v519_v2 = vpop.f32.mrb[1].mxu0 }
  0xe1   :  { %v102_v3 = vcombine.high %v101_v1, %v101_v1  ;;  %v109_v4 = vrot.slane %v101_v1, %v100_v63 }
  0xe3   :  { %v116_v5 = vrot.slane %v102_v3, %v100_v63  ;;  %553 = vmatmul.mubr.msk.f32.vlgmr.msra.gmra.mrb[0].mxu1 %vm20_vm1, %v109_v4 }
  0xe5   :  { %588 = vmatmul.mubr.msk.f32.vlgmr.msra.gmra.mrb[2].mxu0 %vm20_vm1, %v116_v5 }
 0x1b6   :  { %v265_v7 = vpop.f32.mrb[0].mxu1 }
 0x1b7   :  { %v392_v8 = vsel %vm391_vm3, %v265_v7, -3.4028235e+38  ;;  %v554_v9 = vpop.f32.mrb[1].mxu1 }
 0x1b8   :  { %v385_v10 = vpop.f32.mrb[2].mxu0  ;;  %v395_v11 = vsel %vm394_vm4, %v392_v8, -inf }
 0x1b9   :  { %v393_v12 = vsel %vm391_vm3, %v385_v10, -3.4028235e+38  ;;  %396 = vmax.xlane.f32.xlu0 %v395_v11  ;;  %v589_v13 = vpop.f32.mrb[3].mxu0 }
 0x1ba   :  { %v398_v14 = vsel %vm394_vm4, %v393_v12, -inf }
 0x1bd   :  { %399 = vmax.xlane.f32.xlu0 %v398_v14 }
 0x246   :  { %v397_v15 = vpop.xlane.xlu0 %396 }
 0x247   :  { %v401_v16 = vsub.f32 %v392_v8, %v397_v15 }
 0x249   :  { %v403_v17 = vmul.f32 1.442695, %v401_v16 }
 0x24a   :  { %v400_v18 = vpop.xlane.xlu0 %399 }
 0x24b   :  { %667 = vpow2.f32 %v403_v17  ;;  %v402_v19 = vsub.f32 %v393_v12, %v400_v18 }
 0x24d   :  { %v405_v20 = vmul.f32 1.442695, %v402_v19 }
 0x24f   :  { %669 = vpow2.f32 %v405_v20 }
 0x255   :  { %v668_v21 = vpop.eup %667 }
 0x256   :  { %v407_v22 = vsel %vm394_vm4, %v668_v21, 0.0 }
 0x257   :  { %408 = vadd.xlane.f32.xlu1 %v407_v22 }
 0x259   :  { %v670_v23 = vpop.eup %669 }
 0x25a   :  { %v410_v24 = vsel %vm394_vm4, %v670_v23, 0.0 }
 0x25b   :  { %411 = vadd.xlane.f32.xlu1 %v410_v24 }
 0x2e4   :  { %v409_v25 = vpop.xlane.xlu1 %408 }
 0x2e5   :  { %671 = vrcp.f32 %v409_v25 }
 0x2e8   :  { %v412_v26 = vpop.xlane.xlu1 %411 }
 0x2e9   :  { %673 = vrcp.f32 %v412_v26 }
 0x2ef   :  { %v672_v27 = vpop.eup %671 }
 0x2f0   :  { %v415_v28 = vmul.f32 %v672_v27, %v668_v21 }
 0x2f2   :  { %417 = vst [vmem:[#allocation2] sm:$0x1] %v415_v28 }
 0x2f3   :  { %v674_v29 = vpop.eup %673 }
 0x2f4   :  { %v416_v30 = vmul.f32 %v674_v29, %v670_v23 }
 0x2f6   :  { %418 = vst [vmem:[#allocation2 + $0x1] sm:$0x1] %v416_v30 }
 0x2f7   :  { %686 = shalt.err (!%p683_p4)
}
 0x2f8   :  { %s687_s4 = scalar_lea.hbm %s918_s3, 32 }
 0x2f9   :  { %p688_p5 = scmp.ne.s32.totalorder %s918_s3, %s687_s4  ;;  %p691_p6 = scmp.lt.u32.totalorder %s687_s4, %s918_s3 }
 0x2fb   :  { %p693_p7 = pnand %p691_p6, %p688_p5 }
 0x2fd   :  { %696 = shalt.err (!%p693_p7)
}
 0x2fe   :  { %s704_s8 = smov 16   ;;  %s705_s9 = smov 1  }
 0x2ff   :  { %430 = dma.vmem_to_hbm [thread:$0]  %s425_s27, 32, %s918_s3, [#allocation3], %s704_s8, %s704_s8, %s705_s9  }
 0x300   :  { %697 = dma.done.wait [#allocation3], 32  }
 0x301   :  { %698 = vsyncadd [#allocation3], 4294967264 }
 0x302   :  { %434 = vsyncpa [#allocation3], 1 }

</bundles_post_ra>
